<compile_context>
chip_gen: v7x
topology: tpu7x:2x2x1
jax: 0.10.0
libtpu: 0.0.40
codegen_flags: <defaults>
</compile_context>

<pallas_src>
import jax
import jax.numpy as jnp
import numpy as np
from jax.experimental import pallas as pl
from jax.experimental.pallas import tpu as pltpu


def _round_up(v, m):
    return ((v + m - 1) // m) * m


def _blend_kernel(R_ref, t_ref, w_ref, pos_ref, x_ref, out_ref):
    """x_out = blend(x, R@pos + t, w) on sublane/lane-dense tiles.

    R_ref:   (9, S, 128)  gathered rotations, row-major 3x3 per point
    t_ref:   (3, S, 128)  gathered translations
    w_ref:   (1, S, 128)  per-point confidence
    pos_ref: (3, S, 128)  positions
    x_ref:   (3, S, 128)  predicted correspondences
    out_ref: (3, S, 128)
    `ref[k]` is a full (S, 128) sublane-dense tile -> pure dense VPU work.
    """
    p0 = pos_ref[0]
    p1 = pos_ref[1]
    p2 = pos_ref[2]
    # Unrolled 3-term FMA per output coordinate (per-lane VPU, no cross-lane reduce).
    xp0 = R_ref[0] * p0 + R_ref[1] * p1 + R_ref[2] * p2 + t_ref[0]
    xp1 = R_ref[3] * p0 + R_ref[4] * p1 + R_ref[5] * p2 + t_ref[1]
    xp2 = R_ref[6] * p0 + R_ref[7] * p1 + R_ref[8] * p2 + t_ref[2]
    w = w_ref[0]
    # x*w + xp*(1-w) rewritten as xp + (x - xp)*w (saves mults + one live vreg).
    # Note: not bit-exact at w==1, but within fp tolerance of the reference.
    out_ref[0] = xp0 + (x_ref[0] - xp0) * w
    out_ref[1] = xp1 + (x_ref[1] - xp1) * w
    out_ref[2] = xp2 + (x_ref[2] - xp2) * w


def _transform_kernel(R_ref, t_ref, pos_ref, out_ref):
    """cluster_weights=None path: x_out = R @ pos + t (no blend, x never read)."""
    p0 = pos_ref[0]
    p1 = pos_ref[1]
    p2 = pos_ref[2]
    out_ref[0] = R_ref[0] * p0 + R_ref[1] * p1 + R_ref[2] * p2 + t_ref[0]
    out_ref[1] = R_ref[3] * p0 + R_ref[4] * p1 + R_ref[5] * p2 + t_ref[1]
    out_ref[2] = R_ref[6] * p0 + R_ref[7] * p1 + R_ref[8] * p2 + t_ref[2]


def reweighting_transform_forward(data, cluster_weights, R, t, edge_index, *, tile_n=32768):
    """JAX/Pallas equivalent of the per-point transform/blend stage.

    data: (x, pos, batch), x/pos of shape [N, 3]
    cluster_weights: [M, 1] confidence per cluster, or None
    R: [M, 3, 3], t: [M, 3]
    edge_index: (point_idx, cluster_idx), each [N] (point_idx unused, as in the reference)
    Returns (R_point [N,3,3], t_point [N,3], x_out [N,3]).
    """
    x, pos, _batch = data
    _point_idx, cluster_idx = edge_index

    N = x.shape[0]
    M = R.shape[0]
    dtype = x.dtype

    # --- tiling -------------------------------------------------------------------
    # Sublane-dense granule: the point axis maps onto (sublane, lane) = (sub_mult, 128)
    # tiles, so every per-channel block is a whole number of full vregs.
    sub_mult = max(8, 32 // jnp.dtype(dtype).itemsize)   # 8 for f32, 16 for bf16, ...
    granule = sub_mult * 128
    n_g = _round_up(max(N, 1), granule)
    tile_n = _round_up(min(max(int(tile_n), granule), n_g), granule)
    # Keep >= 2 grid steps when the data allows it, so the "parallel" axis can shard
    # across both TensorCores on v7x (negligible extra per-step cost on 1-TC chips).
    if n_g >= 2 * granule:
        tile_n = min(tile_n, _round_up(-(-n_g // 2), granule))
    n_pad = _round_up(N, tile_n)
    pad = n_pad - N
    n_sub = n_pad // 128
    s_tile = tile_n // 128
    grid = (n_pad // tile_n,)

    # --- returned tensors: direct row-major gather of the tiny cluster tables ------
    # (no slice+transpose+reshape of the big lane slabs on the critical path)
    R_flat = jnp.reshape(R, (M, 9))
    R_point = jnp.take(R_flat, cluster_idx, axis=0).reshape(N, 3, 3)
    t_point = jnp.take(t, cluster_idx, axis=0)

    # --- lane-dense / sublane-dense kernel inputs: [C, n_sub, 128] ------------------
    # TODO(synk): if the caller ever stops needing row-major R_point/t_point, fuse this
    # gather into the kernel (VMEM-resident [M,13] table + per-tile cluster_idx) to cut
    # the stage's HBM traffic roughly in half.
    idx = jnp.pad(cluster_idx.astype(jnp.int32), (0, pad))           # pad with 0 (valid idx)
    R_lane = jnp.take(R_flat.astype(dtype).T, idx, axis=1).reshape(9, n_sub, 128)
    t_lane = jnp.take(t.astype(dtype).T, idx, axis=1).reshape(3, n_sub, 128)
    pos_lane = jnp.pad(pos.astype(dtype), ((0, pad), (0, 0))).T.reshape(3, n_sub, 128)

    def spec(rows):
        return pl.BlockSpec((rows, s_tile, 128), lambda i: (0, i, 0))

    cparams = pltpu.CompilerParams(dimension_semantics=("parallel",))

    if cluster_weights is None:
        out_lane = pl.pallas_call(
            _transform_kernel,
            out_shape=jax.ShapeDtypeStruct((3, n_sub, 128), dtype),
            grid=grid,
            in_specs=[spec(9), spec(3), spec(3)],
            out_specs=spec(3),
            compiler_params=cparams,
        )(R_lane, t_lane, pos_lane)
    else:
        w_lane = jnp.take(cluster_weights.astype(dtype).T, idx, axis=1).reshape(1, n_sub, 128)
        x_lane = jnp.pad(x, ((0, pad), (0, 0))).T.reshape(3, n_sub, 128)
        out_lane = pl.pallas_call(
            _blend_kernel,
            out_shape=jax.ShapeDtypeStruct((3, n_sub, 128), dtype),
            grid=grid,
            in_specs=[spec(9), spec(3), spec(1), spec(3), spec(3)],
            out_specs=spec(3),
            compiler_params=cparams,
        )(R_lane, t_lane, w_lane, pos_lane, x_lane)

    # Back to the module's row-major [N, 3] interface (only the 12N-byte output slab).
    x_out = out_lane.reshape(3, n_pad)[:, :N].T
    return R_point, t_point, x_out


def _reference_forward(data, cluster_weights, R, t, edge_index):
    """Pure-JAX reference mirroring the PyTorch semantics exactly."""
    x, pos, _batch = data
    _point_idx, cluster_idx = edge_index
    R_point = jnp.take(R.reshape(-1, 9), cluster_idx, axis=0).reshape(-1, 3, 3)
    t_point = jnp.take(t, cluster_idx, axis=0)
    x_pred = jnp.sum(R_point * pos[:, None, :], axis=-1) + t_point
    if cluster_weights is not None:
        pw = jnp.take(cluster_weights, cluster_idx, axis=0)
        x_out = x * pw + x_pred * (1.0 - pw)
    else:
        x_out = x_pred
    return R_point, t_point, x_out


def _make_inputs(key, N, M):
    k1, k2, k3, k4, k5, k6 = jax.random.split(key, 6)
    x = jax.random.normal(k1, (N, 3), dtype=jnp.float32)
    pos = jax.random.normal(k2, (N, 3), dtype=jnp.float32)
    batch = jnp.zeros((N,), dtype=jnp.int32)
    cluster_weights = jax.random.uniform(k3, (M, 1), dtype=jnp.float32)
    R = jax.random.normal(k4, (M, 3, 3), dtype=jnp.float32)
    t = jax.random.normal(k5, (M, 3), dtype=jnp.float32)
    cluster_idx = jax.random.randint(k6, (N,), 0, M, dtype=jnp.int32)
    point_idx = jnp.arange(N, dtype=jnp.int32)
    return (x, pos, batch), cluster_weights, R, t, (point_idx, cluster_idx)


if __name__ == "__main__":
    key0, key1 = jax.random.split(jax.random.PRNGKey(0))

    # --- Case 1: small cloud (N not a multiple of 128), blend path, single grid step.
    data, cw, R, t, ei = _make_inputs(key0, 200, 8)
    R_pt, t_pt, x_out = reweighting_transform_forward(data, cw, R, t, ei)
    jax.block_until_ready((R_pt, t_pt, x_out))
    R_e, t_e, x_e = _reference_forward(data, cw, R, t, ei)
    np.testing.assert_allclose(np.asarray(R_pt), np.asarray(R_e), rtol=1e-5, atol=1e-5)
    np.testing.assert_allclose(np.asarray(t_pt), np.asarray(t_e), rtol=1e-5, atol=1e-5)
    np.testing.assert_allclose(np.asarray(x_out), np.asarray(x_e), rtol=1e-5, atol=1e-5)

    # --- Case 2: larger ragged cloud, default tile -> tile cap yields >=2 grid steps.
    data2, cw2, R2, t2, ei2 = _make_inputs(key1, 2500, 8)
    R_pt2, t_pt2, x_out2 = reweighting_transform_forward(data2, cw2, R2, t2, ei2)
    jax.block_until_ready((R_pt2, t_pt2, x_out2))
    R_e2, t_e2, x_e2 = _reference_forward(data2, cw2, R2, t2, ei2)
    np.testing.assert_allclose(np.asarray(R_pt2), np.asarray(R_e2), rtol=1e-5, atol=1e-5)
    np.testing.assert_allclose(np.asarray(t_pt2), np.asarray(t_e2), rtol=1e-5, atol=1e-5)
    np.testing.assert_allclose(np.asarray(x_out2), np.asarray(x_e2), rtol=1e-5, atol=1e-5)

    # --- Case 3: cluster_weights=None path, small tile -> multi-step grid + padded tail.
    _, _, x_out_none = reweighting_transform_forward(data2, None, R2, t2, ei2, tile_n=1024)
    jax.block_until_ready(x_out_none)
    _, _, x_e_none = _reference_forward(data2, None, R2, t2, ei2)
    np.testing.assert_allclose(np.asarray(x_out_none), np.asarray(x_e_none), rtol=1e-5, atol=1e-5)

    print("KERNEL_OK")
</pallas_src>

<mosaic_0001>
module attributes {stable_mosaic.version = 11 : i64} {
  func.func @_blend_kernel(%arg0: i32, %arg1: memref<9x8x128xf32, #tpu.memory_space<vmem>>, %arg2: memref<3x8x128xf32, #tpu.memory_space<vmem>>, %arg3: memref<1x8x128xf32, #tpu.memory_space<vmem>>, %arg4: memref<3x8x128xf32, #tpu.memory_space<vmem>>, %arg5: memref<3x8x128xf32, #tpu.memory_space<vmem>>, %arg6: memref<3x8x128xf32, #tpu.memory_space<vmem>>) attributes {dimension_semantics = [#tpu.dimension_semantics<parallel>], iteration_bounds = array<i64: 1>, scalar_prefetch = 0 : i64, scratch_operands = 0 : i64, tpu.core_type = #tpu.core_type<tc>, window_params = [{transform_indices = @transform_0, window_bounds = array<i64: 9, 8, 128>}, {transform_indices = @transform_1, window_bounds = array<i64: 3, 8, 128>}, {transform_indices = @transform_2, window_bounds = array<i64: 1, 8, 128>}, {transform_indices = @transform_3, window_bounds = array<i64: 3, 8, 128>}, {transform_indices = @transform_4, window_bounds = array<i64: 3, 8, 128>}, {transform_indices = @transform_5, window_bounds = array<i64: 3, 8, 128>}]} {
    %c0 = arith.constant 0 : index
    %c0_0 = arith.constant 0 : index
    %c0_1 = arith.constant 0 : index
    %0 = vector.load %arg4[%c0, %c0_0, %c0_1] : memref<3x8x128xf32, #tpu.memory_space<vmem>>, vector<1x8x128xf32>
    %1 = vector.shape_cast %0 : vector<1x8x128xf32> to vector<8x128xf32>
    %c1 = arith.constant 1 : index
    %c0_2 = arith.constant 0 : index
    %c0_3 = arith.constant 0 : index
    %2 = vector.load %arg4[%c1, %c0_2, %c0_3] : memref<3x8x128xf32, #tpu.memory_space<vmem>>, vector<1x8x128xf32>
    %3 = vector.shape_cast %2 : vector<1x8x128xf32> to vector<8x128xf32>
    %c2 = arith.constant 2 : index
    %c0_4 = arith.constant 0 : index
    %c0_5 = arith.constant 0 : index
    %4 = vector.load %arg4[%c2, %c0_4, %c0_5] : memref<3x8x128xf32, #tpu.memory_space<vmem>>, vector<1x8x128xf32>
    %5 = vector.shape_cast %4 : vector<1x8x128xf32> to vector<8x128xf32>
    %c0_6 = arith.constant 0 : index
    %c0_7 = arith.constant 0 : index
    %c0_8 = arith.constant 0 : index
    %6 = vector.load %arg1[%c0_6, %c0_7, %c0_8] : memref<9x8x128xf32, #tpu.memory_space<vmem>>, vector<1x8x128xf32>
    %7 = vector.shape_cast %6 : vector<1x8x128xf32> to vector<8x128xf32>
    %8 = arith.mulf %7, %1 : vector<8x128xf32>
    %c1_9 = arith.constant 1 : index
    %c0_10 = arith.constant 0 : index
    %c0_11 = arith.constant 0 : index
    %9 = vector.load %arg1[%c1_9, %c0_10, %c0_11] : memref<9x8x128xf32, #tpu.memory_space<vmem>>, vector<1x8x128xf32>
    %10 = vector.shape_cast %9 : vector<1x8x128xf32> to vector<8x128xf32>
    %11 = arith.mulf %10, %3 : vector<8x128xf32>
    %12 = arith.addf %8, %11 : vector<8x128xf32>
    %c2_12 = arith.constant 2 : index
    %c0_13 = arith.constant 0 : index
    %c0_14 = arith.constant 0 : index
    %13 = vector.load %arg1[%c2_12, %c0_13, %c0_14] : memref<9x8x128xf32, #tpu.memory_space<vmem>>, vector<1x8x128xf32>
    %14 = vector.shape_cast %13 : vector<1x8x128xf32> to vector<8x128xf32>
    %15 = arith.mulf %14, %5 : vector<8x128xf32>
    %16 = arith.addf %12, %15 : vector<8x128xf32>
    %c0_15 = arith.constant 0 : index
    %c0_16 = arith.constant 0 : index
    %c0_17 = arith.constant 0 : index
    %17 = vector.load %arg2[%c0_15, %c0_16, %c0_17] : memref<3x8x128xf32, #tpu.memory_space<vmem>>, vector<1x8x128xf32>
    %18 = vector.shape_cast %17 : vector<1x8x128xf32> to vector<8x128xf32>
    %19 = arith.addf %16, %18 : vector<8x128xf32>
    %c3 = arith.constant 3 : index
    %c0_18 = arith.constant 0 : index
    %c0_19 = arith.constant 0 : index
    %20 = vector.load %arg1[%c3, %c0_18, %c0_19] : memref<9x8x128xf32, #tpu.memory_space<vmem>>, vector<1x8x128xf32>
    %21 = vector.shape_cast %20 : vector<1x8x128xf32> to vector<8x128xf32>
    %22 = arith.mulf %21, %1 : vector<8x128xf32>
    %c4 = arith.constant 4 : index
    %c0_20 = arith.constant 0 : index
    %c0_21 = arith.constant 0 : index
    %23 = vector.load %arg1[%c4, %c0_20, %c0_21] : memref<9x8x128xf32, #tpu.memory_space<vmem>>, vector<1x8x128xf32>
    %24 = vector.shape_cast %23 : vector<1x8x128xf32> to vector<8x128xf32>
    %25 = arith.mulf %24, %3 : vector<8x128xf32>
    %26 = arith.addf %22, %25 : vector<8x128xf32>
    %c5 = arith.constant 5 : index
    %c0_22 = arith.constant 0 : index
    %c0_23 = arith.constant 0 : index
    %27 = vector.load %arg1[%c5, %c0_22, %c0_23] : memref<9x8x128xf32, #tpu.memory_space<vmem>>, vector<1x8x128xf32>
    %28 = vector.shape_cast %27 : vector<1x8x128xf32> to vector<8x128xf32>
    %29 = arith.mulf %28, %5 : vector<8x128xf32>
    %30 = arith.addf %26, %29 : vector<8x128xf32>
    %c1_24 = arith.constant 1 : index
    %c0_25 = arith.constant 0 : index
    %c0_26 = arith.constant 0 : index
    %31 = vector.load %arg2[%c1_24, %c0_25, %c0_26] : memref<3x8x128xf32, #tpu.memory_space<vmem>>, vector<1x8x128xf32>
    %32 = vector.shape_cast %31 : vector<1x8x128xf32> to vector<8x128xf32>
    %33 = arith.addf %30, %32 : vector<8x128xf32>
    %c6 = arith.constant 6 : index
    %c0_27 = arith.constant 0 : index
    %c0_28 = arith.constant 0 : index
    %34 = vector.load %arg1[%c6, %c0_27, %c0_28] : memref<9x8x128xf32, #tpu.memory_space<vmem>>, vector<1x8x128xf32>
    %35 = vector.shape_cast %34 : vector<1x8x128xf32> to vector<8x128xf32>
    %36 = arith.mulf %35, %1 : vector<8x128xf32>
    %c7 = arith.constant 7 : index
    %c0_29 = arith.constant 0 : index
    %c0_30 = arith.constant 0 : index
    %37 = vector.load %arg1[%c7, %c0_29, %c0_30] : memref<9x8x128xf32, #tpu.memory_space<vmem>>, vector<1x8x128xf32>
    %38 = vector.shape_cast %37 : vector<1x8x128xf32> to vector<8x128xf32>
    %39 = arith.mulf %38, %3 : vector<8x128xf32>
    %40 = arith.addf %36, %39 : vector<8x128xf32>
    %c8 = arith.constant 8 : index
    %c0_31 = arith.constant 0 : index
    %c0_32 = arith.constant 0 : index
    %41 = vector.load %arg1[%c8, %c0_31, %c0_32] : memref<9x8x128xf32, #tpu.memory_space<vmem>>, vector<1x8x128xf32>
    %42 = vector.shape_cast %41 : vector<1x8x128xf32> to vector<8x128xf32>
    %43 = arith.mulf %42, %5 : vector<8x128xf32>
    %44 = arith.addf %40, %43 : vector<8x128xf32>
    %c2_33 = arith.constant 2 : index
    %c0_34 = arith.constant 0 : index
    %c0_35 = arith.constant 0 : index
    %45 = vector.load %arg2[%c2_33, %c0_34, %c0_35] : memref<3x8x128xf32, #tpu.memory_space<vmem>>, vector<1x8x128xf32>
    %46 = vector.shape_cast %45 : vector<1x8x128xf32> to vector<8x128xf32>
    %47 = arith.addf %44, %46 : vector<8x128xf32>
    %c0_36 = arith.constant 0 : index
    %c0_37 = arith.constant 0 : index
    %c0_38 = arith.constant 0 : index
    %48 = vector.load %arg3[%c0_36, %c0_37, %c0_38] : memref<1x8x128xf32, #tpu.memory_space<vmem>>, vector<1x8x128xf32>
    %49 = vector.shape_cast %48 : vector<1x8x128xf32> to vector<8x128xf32>
    %c0_39 = arith.constant 0 : index
    %c0_40 = arith.constant 0 : index
    %c0_41 = arith.constant 0 : index
    %50 = vector.load %arg5[%c0_39, %c0_40, %c0_41] : memref<3x8x128xf32, #tpu.memory_space<vmem>>, vector<1x8x128xf32>
    %51 = vector.shape_cast %50 : vector<1x8x128xf32> to vector<8x128xf32>
    %52 = arith.subf %51, %19 : vector<8x128xf32>
    %53 = arith.mulf %52, %49 : vector<8x128xf32>
    %54 = arith.addf %19, %53 : vector<8x128xf32>
    %c0_42 = arith.constant 0 : index
    %c0_43 = arith.constant 0 : index
    %c0_44 = arith.constant 0 : index
    %55 = vector.load %arg6[%c0_42, %c0_43, %c0_44] : memref<3x8x128xf32, #tpu.memory_space<vmem>>, vector<1x8x128xf32>
    %56 = vector.shape_cast %55 : vector<1x8x128xf32> to vector<8x128xf32>
    %57 = vector.shape_cast %54 : vector<8x128xf32> to vector<1x8x128xf32>
    tpu.vector_store %arg6[%c0_42, %c0_43, %c0_44], %57 {strides = array<i32>} : memref<3x8x128xf32, #tpu.memory_space<vmem>>, vector<1x8x128xf32>,
    %c1_45 = arith.constant 1 : index
    %c0_46 = arith.constant 0 : index
    %c0_47 = arith.constant 0 : index
    %58 = vector.load %arg5[%c1_45, %c0_46, %c0_47] : memref<3x8x128xf32, #tpu.memory_space<vmem>>, vector<1x8x128xf32>
    %59 = vector.shape_cast %58 : vector<1x8x128xf32> to vector<8x128xf32>
    %60 = arith.subf %59, %33 : vector<8x128xf32>
    %61 = arith.mulf %60, %49 : vector<8x128xf32>
    %62 = arith.addf %33, %61 : vector<8x128xf32>
    %c1_48 = arith.constant 1 : index
    %c0_49 = arith.constant 0 : index
    %c0_50 = arith.constant 0 : index
    %63 = vector.load %arg6[%c1_48, %c0_49, %c0_50] : memref<3x8x128xf32, #tpu.memory_space<vmem>>, vector<1x8x128xf32>
    %64 = vector.shape_cast %63 : vector<1x8x128xf32> to vector<8x128xf32>
    %65 = vector.shape_cast %62 : vector<8x128xf32> to vector<1x8x128xf32>
    tpu.vector_store %arg6[%c1_48, %c0_49, %c0_50], %65 {strides = array<i32>} : memref<3x8x128xf32, #tpu.memory_space<vmem>>, vector<1x8x128xf32>,
    %c2_51 = arith.constant 2 : index
    %c0_52 = arith.constant 0 : index
    %c0_53 = arith.constant 0 : index
    %66 = vector.load %arg5[%c2_51, %c0_52, %c0_53] : memref<3x8x128xf32, #tpu.memory_space<vmem>>, vector<1x8x128xf32>
    %67 = vector.shape_cast %66 : vector<1x8x128xf32> to vector<8x128xf32>
    %68 = arith.subf %67, %47 : vector<8x128xf32>
    %69 = arith.mulf %68, %49 : vector<8x128xf32>
    %70 = arith.addf %47, %69 : vector<8x128xf32>
    %c2_54 = arith.constant 2 : index
    %c0_55 = arith.constant 0 : index
    %c0_56 = arith.constant 0 : index
    %71 = vector.load %arg6[%c2_54, %c0_55, %c0_56] : memref<3x8x128xf32, #tpu.memory_space<vmem>>, vector<1x8x128xf32>
    %72 = vector.shape_cast %71 : vector<1x8x128xf32> to vector<8x128xf32>
    %73 = vector.shape_cast %70 : vector<8x128xf32> to vector<1x8x128xf32>
    tpu.vector_store %arg6[%c2_54, %c0_55, %c0_56], %73 {strides = array<i32>} : memref<3x8x128xf32, #tpu.memory_space<vmem>>, vector<1x8x128xf32>,
    return
  }
  func.func @transform_0(%arg0: i32) -> (i32, i32, i32) {
    %c0_i32 = arith.constant 0 : i32
    %c0_i32_0 = arith.constant 0 : i32
    %c0_i32_1 = arith.constant 0 : i32
    return %c0_i32, %arg0, %c0_i32_0 : i32, i32, i32
  }
  func.func @transform_1(%arg0: i32) -> (i32, i32, i32) {
    %c0_i32 = arith.constant 0 : i32
    %c0_i32_0 = arith.constant 0 : i32
    %c0_i32_1 = arith.constant 0 : i32
    return %c0_i32, %arg0, %c0_i32_0 : i32, i32, i32
  }
  func.func @transform_2(%arg0: i32) -> (i32, i32, i32) {
    %c0_i32 = arith.constant 0 : i32
    %c0_i32_0 = arith.constant 0 : i32
    %c0_i32_1 = arith.constant 0 : i32
    return %c0_i32, %arg0, %c0_i32_0 : i32, i32, i32
  }
  func.func @transform_3(%arg0: i32) -> (i32, i32, i32) {
    %c0_i32 = arith.constant 0 : i32
    %c0_i32_0 = arith.constant 0 : i32
    %c0_i32_1 = arith.constant 0 : i32
    return %c0_i32, %arg0, %c0_i32_0 : i32, i32, i32
  }
  func.func @transform_4(%arg0: i32) -> (i32, i32, i32) {
    %c0_i32 = arith.constant 0 : i32
    %c0_i32_0 = arith.constant 0 : i32
    %c0_i32_1 = arith.constant 0 : i32
    return %c0_i32, %arg0, %c0_i32_0 : i32, i32, i32
  }
  func.func @transform_5(%arg0: i32) -> (i32, i32, i32) {
    %c0_i32 = arith.constant 0 : i32
    %c0_i32_0 = arith.constant 0 : i32
    %c0_i32_1 = arith.constant 0 : i32
    return %c0_i32, %arg0, %c0_i32_0 : i32, i32, i32
  }
}

</mosaic_0001>

<bundles_post_ra>
// kernel: tpu_custom_call.1
= control target key start
LH: loop header
LB: loop body
LE: loop exit
PB: predicated region body
PF: predicated region fallthrough
CT: control target
= control target key end

     0   :  { %10 = vsyncpa [#allocation3], 0  ;;  %s451_s0 = inlined_call_operand.hbm [shape: f32[9,8,128], index: 0, kind: input, shape index: {}]   ;;  %s452_s1 = inlined_call_operand.hbm [shape: f32[3,8,128], index: 1, kind: input, shape index: {}]   ;;  %s453_s2 = inlined_call_operand.hbm [shape: f32[1,8,128], index: 2, kind: input, shape index: {}]   ;;  %s454_s3 = inlined_call_operand.hbm [shape: f32[3,8,128], index: 3, kind: input, shape index: {}]   ;;  %s455_s4 = inlined_call_operand.hbm [shape: f32[3,8,128], index: 4, kind: input, shape index: {}]   ;;  %s456_s5 = inlined_call_operand.hbm [shape: f32[3,8,128], index: 5, kind: output, shape index: {}]  }
   0x1   :  { %11 = vsyncpa [#allocation6], 0 }
   0x2   :  { %12 = vsyncpa [#allocation9], 0 }
   0x3   :  { %13 = vsyncpa [#allocation4], 0  ;;  %s319_s18 = smov [#allocation5]   ;;  %s320_s20 = smov [#allocation8]  }
   0x4   :  { %s31_s19 = sshll.u32 %s319_s18, 4  ;;  %s53_s21 = sshll.u32 %s320_s20, 4  ;;  %s32_s19 = int_to_ptr.vmem [resolvable:$true] %s31_s19  ;;  %s357_s21 = int_to_ptr.vmem [resolvable:$true] %s53_s21 }
   0x5   :  { %s179_s24 = scalar_lea.hbm %s452_s1, 384 }
   0x6   :  { %p180_p0 = scmp.ne.s32.totalorder %s452_s1, %s179_s24  ;;  %p183_p1 = scmp.lt.u32.totalorder %s179_s24, %s452_s1 }
   0x8   :  { %p185_p2 = pnand %p183_p1, %p180_p0 }
   0xa   :  { %188 = shalt.err (!%p185_p2)
}
   0xb   :  { %s189_s29 = scalar_lea.vmem %s32_s19, 384  ;;  %p194_p4 = scmp.lt.s32.totalorder %s32_s19, %s32_s19 }
   0xc   :  { %p190_p3 = scmp.ne.s32.totalorder %s32_s19, %s189_s29  ;;  %p195_p5 = scmp.lt.s32.totalorder %s189_s29, %s189_s29 }
   0xe   :  { %p196_p6 = por %p195_p5, %p194_p4 }
  0x10   :  { %p197_p7 = pnand %p196_p6, %p190_p3 }
  0x12   :  { %200 = shalt.err (!%p197_p7)
}
  0x13   :  { %s321_s30 = smov 128   ;;  %s322_s6 = smov 8  }
  0x14   :  { %37 = dma.hbm_to_vmem [thread:$0]  %s452_s1, 384, %s32_s19, [#allocation6], %s321_s30, %s321_s30, %s322_s6  }
  0x15   :  { %s201_s11 = scalar_lea.hbm %s454_s3, 384 }
  0x16   :  { %p202_p8 = scmp.ne.s32.totalorder %s454_s3, %s201_s11  ;;  %p205_p9 = scmp.lt.u32.totalorder %s201_s11, %s454_s3 }
  0x18   :  { %p207_p10 = pnand %p205_p9, %p202_p8 }
  0x1a   :  { %210 = shalt.err (!%p207_p10)
}
  0x1b   :  { %s211_s16 = scalar_lea.vmem %s357_s21, 384  ;;  %p216_p12 = scmp.lt.s32.totalorder %s357_s21, %s357_s21 }
  0x1c   :  { %p212_p11 = scmp.ne.s32.totalorder %s357_s21, %s211_s16  ;;  %p217_p13 = scmp.lt.s32.totalorder %s211_s16, %s211_s16 }
  0x1e   :  { %p218_p0 = por %p217_p13, %p216_p12 }
  0x20   :  { %p219_p1 = pnand %p218_p0, %p212_p11 }
  0x22   :  { %222 = shalt.err (!%p219_p1)
}
  0x23   :  { %59 = dma.hbm_to_vmem [thread:$0]  %s454_s3, 384, %s357_s21, [#allocation9], %s321_s30, %s321_s30, %s322_s6  }
  0x24   :  { %s323_s18 = smov [#allocation2]   ;;  %s324_s20 = smov [#allocation7]  }
  0x25   :  { %s19_s19 = sshll.u32 %s323_s18, 4  ;;  %s44_s22 = sshll.u32 %s324_s20, 4  ;;  %s20_s19 = int_to_ptr.vmem [resolvable:$true] %s19_s19  ;;  %s45_s22 = int_to_ptr.vmem [resolvable:$true] %s44_s22 }
  0x26   :  { %s223_s25 = scalar_lea.hbm %s451_s0, 1152 }
  0x27   :  { %p224_p2 = scmp.ne.s32.totalorder %s451_s0, %s223_s25  ;;  %p227_p3 = scmp.lt.u32.totalorder %s223_s25, %s451_s0 }
  0x29   :  { %p229_p4 = pnand %p227_p3, %p224_p2 }
  0x2b   :  { %232 = shalt.err (!%p229_p4)
}
  0x2c   :  { %s233_s3 = scalar_lea.vmem %s20_s19, 1152  ;;  %p238_p6 = scmp.lt.s32.totalorder %s20_s19, %s20_s19 }
  0x2d   :  { %p234_p5 = scmp.ne.s32.totalorder %s20_s19, %s233_s3  ;;  %p239_p7 = scmp.lt.s32.totalorder %s233_s3, %s233_s3 }
  0x2f   :  { %p240_p8 = por %p239_p7, %p238_p6 }
  0x31   :  { %p241_p9 = pnand %p240_p8, %p234_p5 }
  0x33   :  { %244 = shalt.err (!%p241_p9)
}
  0x34   :  { %25 = dma.hbm_to_vmem [thread:$0]  %s451_s0, 1152, %s20_s19, [#allocation3], %s321_s30, %s321_s30, %s322_s6  }
  0x35   :  { %s245_s10 = scalar_lea.hbm %s453_s2, 128 }
  0x36   :  { %p246_p10 = scmp.ne.s32.totalorder %s453_s2, %s245_s10  ;;  %p249_p11 = scmp.lt.u32.totalorder %s245_s10, %s453_s2 }
  0x38   :  { %p251_p12 = pnand %p249_p11, %p246_p10 }
  0x3a   :  { %254 = shalt.err (!%p251_p12)
}
  0x3b   :  { %s255_s15 = scalar_lea.vmem %s45_s22, 128  ;;  %p260_p0 = scmp.lt.s32.totalorder %s45_s22, %s45_s22 }
  0x3c   :  { %p256_p13 = scmp.ne.s32.totalorder %s45_s22, %s255_s15  ;;  %p261_p1 = scmp.lt.s32.totalorder %s255_s15, %s255_s15 }
  0x3e   :  { %p262_p2 = por %p261_p1, %p260_p0 }
  0x40   :  { %p263_p3 = pnand %p262_p2, %p256_p13 }
  0x42   :  { %266 = shalt.err (!%p263_p3)
}
  0x43   :  { %47 = dma.hbm_to_vmem [thread:$0]  %s453_s2, 128, %s45_s22, [#allocation6]  }
  0x44   :  { %s325_s1 = smov [#allocation10]   ;;  %s267_s20 = scalar_lea.hbm %s455_s4, 384 }
  0x45   :  { %s65_s17 = sshll.u32 %s325_s1, 4  ;;  %p268_p4 = scmp.ne.s32.totalorder %s455_s4, %s267_s20  ;;  %s66_s17 = int_to_ptr.vmem [resolvable:$true] %s65_s17 }
  0x46   :  { %p271_p5 = scmp.lt.u32.totalorder %s267_s20, %s455_s4 }
  0x48   :  { %p273_p6 = pnand %p271_p5, %p268_p4 }
  0x4a   :  { %276 = shalt.err (!%p273_p6)
}
  0x4b   :  { %s277_s27 = scalar_lea.vmem %s66_s17, 384  ;;  %p282_p8 = scmp.lt.s32.totalorder %s66_s17, %s66_s17 }
  0x4c   :  { %p278_p7 = scmp.ne.s32.totalorder %s66_s17, %s277_s27  ;;  %p283_p9 = scmp.lt.s32.totalorder %s277_s27, %s277_s27 }
  0x4e   :  { %p284_p10 = por %p283_p9, %p282_p8 }
  0x50   :  { %p285_p11 = pnand %p284_p10, %p278_p7 }
  0x52   :  { %288 = shalt.err (!%p285_p11)
}
  0x53   :  { %71 = dma.hbm_to_vmem [thread:$0]  %s455_s4, 384, %s66_s17, [#allocation9], %s321_s30, %s321_s30, %s322_s6  }
  0x54   :  { %311 = dma.done.wait [#allocation3], 1152  }
  0x55   :  { %312 = vsyncadd [#allocation3], 4294966144 }
  0x56   :  { %313 = dma.done.wait [#allocation6], 512  }
  0x57   :  { %314 = vsyncadd [#allocation6], 4294966784 }
  0x58   :  { %315 = dma.done.wait [#allocation9], 768  }
  0x59   :  { %316 = vsyncadd [#allocation9], 4294966528  ;;  %v87_v0 = vld [vmem:[#allocation8] sm:$0xff]  ;;  %v89_v1 = vld [vmem:[#allocation8 + $0x8] sm:$0xff]  ;;  %s326_s4 = smov [#allocation11]  }
  0x5a   :  { %v91_v2 = vld [vmem:[#allocation8 + $0x10] sm:$0xff]  ;;  %v92_v3 = vld [vmem:[#allocation2] sm:$0xff]  ;;  %v95_v4 = vld [vmem:[#allocation2 + $0x8] sm:$0xff]  ;;  %s157_s28 = sshll.u32 %s326_s4, 4  ;;  %s158_s28 = int_to_ptr.vmem [resolvable:$true] %s157_s28 }
  0x5b   :  { %v99_v5 = vld [vmem:[#allocation2 + $0x10] sm:$0xff]  ;;  %v93_v6 = vmul.f32 %v92_v3, %v87_v0  ;;  %v96_v7 = vmul.f32 %v95_v4, %v89_v1  ;;  %v105_v9 = vld [vmem:[#allocation2 + $0x18] sm:$0xff]  ;;  %v108_v10 = vld [vmem:[#allocation2 + $0x20] sm:$0xff]  ;;  %s289_s29 = scalar_lea.vmem %s158_s28, 384  ;;  %p294_p13 = scmp.lt.s32.totalorder %s158_s28, %s158_s28 }
  0x5c   :  { %v100_v8 = vmul.f32 %v99_v5, %v91_v2  ;;  %v112_v11 = vld [vmem:[#allocation2 + $0x28] sm:$0xff]  ;;  %v106_v13 = vmul.f32 %v105_v9, %v87_v0  ;;  %v109_v14 = vmul.f32 %v108_v10, %v89_v1  ;;  %v119_v16 = vld [vmem:[#allocation2 + $0x30] sm:$0xff]  ;;  %v122_v19 = vld [vmem:[#allocation2 + $0x38] sm:$0xff]  ;;  %p290_p12 = scmp.ne.s32.totalorder %s158_s28, %s289_s29  ;;  %p295_p0 = scmp.lt.s32.totalorder %s289_s29, %s289_s29 }
  0x5d   :  { %v97_v12 = vadd.f32 %v96_v7, %v93_v6  ;;  %v113_v15 = vmul.f32 %v112_v11, %v91_v2  ;;  %v102_v17 = vld [vmem:[#allocation5] sm:$0xff]  ;;  %v120_v18 = vmul.f32 %v119_v16, %v87_v0  ;;  %v126_v20 = vld [vmem:[#allocation2 + $0x40] sm:$0xff]  ;;  %v123_v23 = vmul.f32 %v122_v19, %v89_v1  ;;  %v116_v26 = vld [vmem:[#allocation5 + $0x8] sm:$0xff] }
  0x5e   :  { %v110_v22 = vadd.f32 %v109_v14, %v106_v13  ;;  %v127_v24 = vmul.f32 %v126_v20, %v91_v2  ;;  %v133_v25 = vld [vmem:[#allocation10] sm:$0xff]  ;;  %v139_v31 = vld [vmem:[#allocation10 + $0x8] sm:$0xff]  ;;  %v130_v32 = vld [vmem:[#allocation5 + $0x10] sm:$0xff]  ;;  %p296_p1 = por %p295_p0, %p294_p13 }
  0x5f   :  { %v101_v21 = vadd.f32 %v100_v8, %v97_v12  ;;  %v124_v29 = vadd.f32 %v123_v23, %v120_v18  ;;  %v132_v30 = vld [vmem:[#allocation7] sm:$0xff]  ;;  %v146_v36 = vld [vmem:[#allocation10 + $0x10] sm:$0xff] }
  0x60   :  { %v114_v28 = vadd.f32 %v113_v15, %v110_v22  ;;  %p297_p2 = pnand %p296_p1, %p290_p12 }
  0x61   :  { %v103_v27 = vadd.f32 %v102_v17, %v101_v21  ;;  %v128_v35 = vadd.f32 %v127_v24, %v124_v29 }
  0x62   :  { %v117_v34 = vadd.f32 %v116_v26, %v114_v28 }
  0x63   :  { %v134_v33 = vsub.f32 %v133_v25, %v103_v27  ;;  %v131_v39 = vadd.f32 %v130_v32, %v128_v35 }
  0x64   :  { %v140_v38 = vsub.f32 %v139_v31, %v117_v34 }
  0x65   :  { %v135_v37 = vmul.f32 %v134_v33, %v132_v30  ;;  %v147_v42 = vsub.f32 %v146_v36, %v131_v39 }
  0x66   :  { %v141_v41 = vmul.f32 %v140_v38, %v132_v30 }
  0x67   :  { %v136_v40 = vadd.f32 %v135_v37, %v103_v27  ;;  %v148_v44 = vmul.f32 %v147_v42, %v132_v30 }
  0x68   :  { %v142_v43 = vadd.f32 %v141_v41, %v117_v34 }
  0x69   :  { %137 = vst [vmem:[#allocation11] sm:$0xff] %v136_v40  ;;  %v149_v45 = vadd.f32 %v148_v44, %v131_v39 }
  0x6a   :  { %144 = vst [vmem:[#allocation11 + $0x8] sm:$0xff] %v142_v43 }
  0x6b   :  { %151 = vst [vmem:[#allocation11 + $0x10] sm:$0xff] %v149_v45 }
  0x6c   :  { %300 = shalt.err (!%p297_p2)
}
  0x6d   :  { %s301_s7 = scalar_lea.hbm %s456_s5, 384 }
  0x6e   :  { %p302_p3 = scmp.ne.s32.totalorder %s456_s5, %s301_s7  ;;  %p305_p4 = scmp.lt.u32.totalorder %s301_s7, %s456_s5 }
  0x70   :  { %p307_p5 = pnand %p305_p4, %p302_p3 }
  0x72   :  { %310 = shalt.err (!%p307_p5)
}
  0x73   :  { %163 = dma.vmem_to_hbm [thread:$0]  %s158_s28, 384, %s456_s5, [#allocation4], %s321_s30, %s321_s30, %s322_s6  }
  0x74   :  { %317 = dma.done.wait [#allocation4], 384  }
  0x75   :  { %318 = vsyncadd [#allocation4], 4294966912 }
  0x76   :  { %167 = vsyncpa [#allocation3], 1 }
  0x77   :  { %168 = vsyncpa [#allocation6], 1 }
  0x78   :  { %169 = vsyncpa [#allocation9], 1 }
  0x79   :  { %170 = vsyncpa [#allocation4], 1 }

</bundles_post_ra>
